<compile_context>
chip_gen: v7x
topology: tpu7x:2x2x1
jax: 0.10.0
libtpu: 0.0.40
codegen_flags: <defaults>
</compile_context>

<pallas_src>
import jax
import jax.numpy as jnp
from jax import lax
from jax.experimental import pallas as pl
from jax.experimental.pallas import tpu as pltpu

# ---- small configuration consistent with the module ----
BATCH = 2
NUM_TOKENS = 8      # multiple of 8 -> dense sublanes
EMBED_DIM = 32      # in_dim of the Linear
PROJ_DIM = 256      # proj_dim (nn.Linear default in the module), lane-dense


# ------------------------- fused Pallas kernel -------------------------

def prompt_encoder_kernel(x_ref, wt_ref, b_ref, sim_ref, stats_ref):
    # x_ref: (2*B*N, E) -- rows [0, B*N) are pos (batch-major), [B*N, 2*B*N) neg
    # wt_ref: (E, P), b_ref: (1, P)
    # sim_ref: (B, N, N), stats_ref: (4*B, P)
    B, N, _ = sim_ref.shape
    BN = B * N

    x = x_ref[...]                                         # (2*B*N, E)

    # --- cosine normalization: x / max(||x||, eps) == x * rsqrt(max(||x||^2, eps^2))
    eps = 1e-12
    ss = jnp.sum(x * x, axis=-1, keepdims=True)
    x_nrm = x * lax.rsqrt(jnp.maximum(ss, eps * eps))
    pos_nrm = x_nrm[:BN]                                   # (B*N, E)
    neg_nrm = x_nrm[BN:]                                   # (B*N, E)

    # --- cosine similarity: ONE MXU push, contract on last axis of both ---
    big_sim = lax.dot_general(
        pos_nrm, neg_nrm, (((1,), (1,)), ((), ())),
        preferred_element_type=jnp.float32)                # (B*N, B*N)
    for bi in range(B):                                    # static unroll, B=2
        sim_ref[bi, :, :] = big_sim[bi * N:(bi + 1) * N, bi * N:(bi + 1) * N]

    # --- shared Linear projection (no bias; std is bias-invariant) ---
    proj = jnp.dot(x, wt_ref[...], preferred_element_type=jnp.float32)  # (2BN, P)
    P = proj.shape[1]
    proj_g = proj.reshape(2 * B, N, P)                     # tile-aligned sublane split

    # --- single-pass token statistics (mean / unbiased std, ddof=1) ---
    inv_n = 1.0 / N
    inv_nm1 = 1.0 / (N - 1)                                # NOTE: requires N > 1
    s1 = jnp.sum(proj_g, axis=1)                           # (2B, P)
    s2 = jnp.sum(proj_g * proj_g, axis=1)                  # (2B, P)
    mean = s1 * inv_n
    var = jnp.maximum(s2 - mean * s1, 0.0) * inv_nm1       # sumsq - N*mean^2
    std = jnp.sqrt(var)

    # --- coalesced stats slab: rows [0,2B)=means(+bias), [2B,4B)=stds ---
    stats_ref[0:2 * B, :] = mean + b_ref[...]
    stats_ref[2 * B:4 * B, :] = std


# ------------------------- wrapper -------------------------

def prompt_encoder_forward(pos_embeds, neg_embeds, params):
    """pos_embeds, neg_embeds: (B, N, E) float32. Returns dict like the module."""
    B, N, E = pos_embeds.shape
    P = params['w'].shape[0]
    wt = params['w'].T.astype(jnp.float32)                 # (E, P)
    b = params['b'].reshape(1, P).astype(jnp.float32)      # (1, P)

    # Pre-stack pos + neg (all batches) into one MXU-ready slab: (2*B*N, E)
    x_all = jnp.concatenate(
        [pos_embeds.reshape(B * N, E), neg_embeds.reshape(B * N, E)], axis=0
    ).astype(jnp.float32)

    vmem_spec = pl.BlockSpec(memory_space=pltpu.MemorySpace.VMEM)

    sim, stats = pl.pallas_call(
        prompt_encoder_kernel,
        out_shape=(
            jax.ShapeDtypeStruct((B, N, N), jnp.float32),  # sim_matrix
            jax.ShapeDtypeStruct((4 * B, P), jnp.float32),  # coalesced stats slab
        ),
        in_specs=[vmem_spec, vmem_spec, vmem_spec],
        out_specs=(vmem_spec, vmem_spec),
    )(x_all, wt, b)

    # Split the (4*B, P) slab: [pos_mean(B), neg_mean(B), pos_std(B), neg_std(B)]
    return {
        'sim_matrix': sim,
        'pos_mean': stats[0:B],
        'neg_mean': stats[B:2 * B],
        'pos_std': stats[2 * B:3 * B],
        'neg_std': stats[3 * B:4 * B],
    }


# ------------------------- deterministic init + reference -------------------------

def init_params(key):
    kw, kb = jax.random.split(key)
    bound = 1.0 / (EMBED_DIM ** 0.5)        # PyTorch nn.Linear default init range
    w = jax.random.uniform(kw, (PROJ_DIM, EMBED_DIM), jnp.float32, -bound, bound)
    b = jax.random.uniform(kb, (PROJ_DIM,), jnp.float32, -bound, bound)
    return {'w': w, 'b': b}


def ref_forward(pos, neg, w, b):
    eps = 1e-12
    pn = pos / jnp.maximum(jnp.linalg.norm(pos, axis=-1, keepdims=True), eps)
    nn_ = neg / jnp.maximum(jnp.linalg.norm(neg, axis=-1, keepdims=True), eps)
    sim = jnp.einsum('bnd,bmd->bnm', pn, nn_)
    pp = jnp.einsum('bne,pe->bnp', pos, w) + b
    np_ = jnp.einsum('bne,pe->bnp', neg, w) + b
    return {'sim_matrix': sim,
            'pos_mean': pp.mean(axis=1), 'pos_std': jnp.std(pp, axis=1, ddof=1),
            'neg_mean': np_.mean(axis=1), 'neg_std': jnp.std(np_, axis=1, ddof=1)}


if __name__ == "__main__":
    key = jax.random.PRNGKey(0)
    kp, kpos, kneg = jax.random.split(key, 3)
    params = init_params(kp)
    pos_embeds = jax.random.normal(kpos, (BATCH, NUM_TOKENS, EMBED_DIM), jnp.float32)
    neg_embeds = jax.random.normal(kneg, (BATCH, NUM_TOKENS, EMBED_DIM), jnp.float32)

    out = prompt_encoder_forward(pos_embeds, neg_embeds, params)
    jax.block_until_ready(out)

    assert out['sim_matrix'].shape == (BATCH, NUM_TOKENS, NUM_TOKENS)
    assert out['pos_mean'].shape == (BATCH, PROJ_DIM)
    assert out['pos_std'].shape == (BATCH, PROJ_DIM)
    assert out['neg_mean'].shape == (BATCH, PROJ_DIM)
    assert out['neg_std'].shape == (BATCH, PROJ_DIM)

    ref = ref_forward(pos_embeds, neg_embeds, params['w'], params['b'])
    for k in ('sim_matrix', 'pos_mean', 'pos_std', 'neg_mean', 'neg_std'):
        assert bool(jnp.all(jnp.isfinite(out[k]))), k
        assert bool(jnp.allclose(out[k], ref[k], atol=1e-5, rtol=1e-5)), k

    print("KERNEL_OK")
</pallas_src>

<mosaic_0001>
module attributes {stable_mosaic.version = 11 : i64} {
  func.func @prompt_encoder_kernel(%arg0: memref<32x32xf32, #tpu.memory_space<vmem>>, %arg1: memref<32x256xf32, #tpu.memory_space<vmem>>, %arg2: memref<1x256xf32, #tpu.memory_space<vmem>>, %arg3: memref<2x8x8xf32, #tpu.memory_space<vmem>>, %arg4: memref<8x256xf32, #tpu.memory_space<vmem>>) attributes {dimension_semantics = [], scalar_prefetch = 0 : i64, scratch_operands = 0 : i64, tpu.core_type = #tpu.core_type<tc>} {
    %c0 = arith.constant 0 : index
    %c0_0 = arith.constant 0 : index
    %0 = vector.load %arg0[%c0, %c0_0] : memref<32x32xf32, #tpu.memory_space<vmem>>, vector<32x32xf32>
    %1 = arith.mulf %0, %0 : vector<32x32xf32>
    %cst = arith.constant dense<0.000000e+00> : vector<32xf32>
    %2 = vector.multi_reduction <add>, %1, %cst [1] : vector<32x32xf32> to vector<32xf32>
    %3 = vector.shape_cast %2 : vector<32xf32> to vector<32x1xf32>
    %cst_1 = arith.constant 1.000000e-24 : f32
    %4 = vector.broadcast %cst_1 : f32 to vector<32x1xf32>
    %5 = arith.maximumf %3, %4 : vector<32x1xf32>
    %6 = math.rsqrt %5 : vector<32x1xf32>
    %7 = vector.broadcast %6 : vector<32x1xf32> to vector<32x32xf32>
    %8 = arith.mulf %0, %7 : vector<32x32xf32>
    %9 = vector.extract_strided_slice %8 {offsets = [0, 0], sizes = [16, 32], strides = [1, 1]} : vector<32x32xf32> to vector<16x32xf32>
    %10 = vector.extract_strided_slice %8 {offsets = [16, 0], sizes = [16, 32], strides = [1, 1]} : vector<32x32xf32> to vector<16x32xf32>
    %cst_2 = arith.constant dense<0.000000e+00> : vector<16x16xf32>
    %11 = tpu.matmul %9, %10, %cst_2 {dimension_numbers = #tpu.dot_dimension_numbers<[1], [1], [0], [0], [0, 0, 1, 0], [], []>} : vector<16x32xf32>, vector<16x32xf32>, vector<16x16xf32> -> vector<16x16xf32>
    %12 = vector.extract_strided_slice %11 {offsets = [0, 0], sizes = [8, 8], strides = [1, 1]} : vector<16x16xf32> to vector<8x8xf32>
    %c0_3 = arith.constant 0 : index
    %c0_4 = arith.constant 0 : index
    %c0_5 = arith.constant 0 : index
    %13 = vector.load %arg3[%c0_3, %c0_4, %c0_5] : memref<2x8x8xf32, #tpu.memory_space<vmem>>, vector<1x8x8xf32>
    %14 = vector.shape_cast %13 : vector<1x8x8xf32> to vector<8x8xf32>
    %15 = vector.shape_cast %12 : vector<8x8xf32> to vector<1x8x8xf32>
    tpu.vector_store %arg3[%c0_3, %c0_4, %c0_5], %15 {strides = array<i32>} : memref<2x8x8xf32, #tpu.memory_space<vmem>>, vector<1x8x8xf32>,
    %16 = vector.extract_strided_slice %11 {offsets = [8, 8], sizes = [8, 8], strides = [1, 1]} : vector<16x16xf32> to vector<8x8xf32>
    %c1 = arith.constant 1 : index
    %c0_6 = arith.constant 0 : index
    %c0_7 = arith.constant 0 : index
    %17 = vector.load %arg3[%c1, %c0_6, %c0_7] : memref<2x8x8xf32, #tpu.memory_space<vmem>>, vector<1x8x8xf32>
    %18 = vector.shape_cast %17 : vector<1x8x8xf32> to vector<8x8xf32>
    %19 = vector.shape_cast %16 : vector<8x8xf32> to vector<1x8x8xf32>
    tpu.vector_store %arg3[%c1, %c0_6, %c0_7], %19 {strides = array<i32>} : memref<2x8x8xf32, #tpu.memory_space<vmem>>, vector<1x8x8xf32>,
    %c0_8 = arith.constant 0 : index
    %c0_9 = arith.constant 0 : index
    %20 = vector.load %arg1[%c0_8, %c0_9] : memref<32x256xf32, #tpu.memory_space<vmem>>, vector<32x256xf32>
    %cst_10 = arith.constant dense<0.000000e+00> : vector<32x256xf32>
    %21 = tpu.matmul %0, %20, %cst_10 {dimension_numbers = #tpu.dot_dimension_numbers<[1], [0], [0], [1], [0, 0, 1, 1], [], []>} : vector<32x32xf32>, vector<32x256xf32>, vector<32x256xf32> -> vector<32x256xf32>
    %22 = vector.shape_cast %21 : vector<32x256xf32> to vector<4x8x256xf32>
    %cst_11 = arith.constant dense<0.000000e+00> : vector<4x256xf32>
    %23 = vector.multi_reduction <add>, %22, %cst_11 [1] : vector<4x8x256xf32> to vector<4x256xf32>
    %24 = arith.mulf %22, %22 : vector<4x8x256xf32>
    %cst_12 = arith.constant dense<0.000000e+00> : vector<4x256xf32>
    %25 = vector.multi_reduction <add>, %24, %cst_12 [1] : vector<4x8x256xf32> to vector<4x256xf32>
    %cst_13 = arith.constant 1.250000e-01 : f32
    %26 = vector.broadcast %cst_13 : f32 to vector<4x256xf32>
    %27 = arith.mulf %23, %26 : vector<4x256xf32>
    %28 = arith.mulf %27, %23 : vector<4x256xf32>
    %29 = arith.subf %25, %28 : vector<4x256xf32>
    %cst_14 = arith.constant 0.000000e+00 : f32
    %30 = vector.broadcast %cst_14 : f32 to vector<4x256xf32>
    %31 = arith.maximumf %29, %30 : vector<4x256xf32>
    %cst_15 = arith.constant 0.142857149 : f32
    %32 = vector.broadcast %cst_15 : f32 to vector<4x256xf32>
    %33 = arith.mulf %31, %32 : vector<4x256xf32>
    %34 = math.sqrt %33 : vector<4x256xf32>
    %c0_16 = arith.constant 0 : index
    %c0_17 = arith.constant 0 : index
    %35 = vector.load %arg2[%c0_16, %c0_17] : memref<1x256xf32, #tpu.memory_space<vmem>>, vector<1x256xf32>
    %36 = vector.broadcast %35 : vector<1x256xf32> to vector<4x256xf32>
    %37 = arith.addf %27, %36 : vector<4x256xf32>
    %c0_18 = arith.constant 0 : index
    %c0_19 = arith.constant 0 : index
    %38 = vector.load %arg4[%c0_18, %c0_19] : memref<8x256xf32, #tpu.memory_space<vmem>>, vector<4x256xf32>
    tpu.vector_store %arg4[%c0_18, %c0_19], %37 {strides = array<i32>} : memref<8x256xf32, #tpu.memory_space<vmem>>, vector<4x256xf32>,
    %c4 = arith.constant 4 : index
    %c0_20 = arith.constant 0 : index
    %39 = vector.load %arg4[%c4, %c0_20] : memref<8x256xf32, #tpu.memory_space<vmem>>, vector<4x256xf32>
    tpu.vector_store %arg4[%c4, %c0_20], %34 {strides = array<i32>} : memref<8x256xf32, #tpu.memory_space<vmem>>, vector<4x256xf32>,
    return
  }
}

</mosaic_0001>

<bundles_post_ra>
// kernel: tpu_custom_call.1
= control target key start
LH: loop header
LB: loop body
LE: loop exit
PB: predicated region body
PF: predicated region fallthrough
CT: control target
= control target key end

     0   :  { %10 = vsyncpa [#allocation3], 0  ;;  %s942_s0 = inlined_call_operand.hbm [shape: f32[32,32], index: 0, kind: input, shape index: {}]   ;;  %s943_s1 = inlined_call_operand.hbm [shape: f32[32,256], index: 1, kind: input, shape index: {}]   ;;  %s944_s2 = inlined_call_operand.vmem [shape: f32[1,256], index: 2, kind: input, shape index: {}]   ;;  %s945_s3 = inlined_call_operand.hbm [shape: f32[2,8,8], index: 3, kind: output, shape index: {0}]   ;;  %s946_s4 = inlined_call_operand.hbm [shape: f32[8,256], index: 4, kind: output, shape index: {1}]  }
   0x1   :  { %11 = vsyncpa [#allocation6], 0 }
   0x2   :  { %12 = vsyncpa [#allocation4], 0 }
   0x3   :  { %13 = vsyncpa [#allocation9], 0  ;;  %s750_s15 = smov [#allocation2]   ;;  %s654_s19 = scalar_lea.hbm %s942_s0, 512 }
   0x4   :  { %s19_s16 = sshll.u32 %s750_s15, 4  ;;  %p655_p0 = scmp.ne.s32.totalorder %s942_s0, %s654_s19  ;;  %s20_s16 = int_to_ptr.vmem [resolvable:$true] %s19_s16 }
   0x5   :  { %p658_p1 = scmp.lt.u32.totalorder %s654_s19, %s942_s0 }
   0x7   :  { %p660_p2 = pnand %p658_p1, %p655_p0 }
   0x9   :  { %663 = shalt.err (!%p660_p2)
}
   0xa   :  { %s664_s24 = scalar_lea.vmem %s20_s16, 512  ;;  %p669_p4 = scmp.lt.s32.totalorder %s20_s16, %s20_s16 }
   0xb   :  { %p665_p3 = scmp.ne.s32.totalorder %s20_s16, %s664_s24  ;;  %p670_p5 = scmp.lt.s32.totalorder %s664_s24, %s664_s24 }
   0xd   :  { %p671_p6 = por %p670_p5, %p669_p4 }
   0xf   :  { %p672_p7 = pnand %p671_p6, %p665_p3 }
  0x11   :  { %675 = shalt.err (!%p672_p7)
}
  0x12   :  { %s751_s25 = smov 128   ;;  %s752_s26 = smov 8  }
  0x13   :  { %25 = dma.hbm_to_vmem [thread:$0]  %s942_s0, 512, %s20_s16, [#allocation3], %s751_s25, %s751_s25, %s752_s26  }
  0x14   :  { %s753_s29 = smov [#allocation5]   ;;  %s676_s7 = scalar_lea.hbm %s943_s1, 1024 }
  0x15   :  { %s31_s30 = sshll.u32 %s753_s29, 4  ;;  %p677_p8 = scmp.ne.s32.totalorder %s943_s1, %s676_s7  ;;  %s32_s30 = int_to_ptr.vmem [resolvable:$true] %s31_s30 }
  0x16   :  { %p680_p9 = scmp.lt.u32.totalorder %s676_s7, %s943_s1 }
  0x18   :  { %p682_p10 = pnand %p680_p9, %p677_p8 }
  0x1a   :  { %685 = shalt.err (!%p682_p10)
}
  0x1b   :  { %s686_s12 = scalar_lea.vmem %s32_s30, 1024  ;;  %p691_p12 = scmp.lt.s32.totalorder %s32_s30, %s32_s30 }
  0x1c   :  { %p687_p11 = scmp.ne.s32.totalorder %s32_s30, %s686_s12  ;;  %p692_p13 = scmp.lt.s32.totalorder %s686_s12, %s686_s12 }
  0x1e   :  { %p693_p0 = por %p692_p13, %p691_p12 }
  0x20   :  { %p694_p1 = pnand %p693_p0, %p687_p11 }
  0x22   :  { %697 = shalt.err (!%p694_p1)
}
  0x23   :  { %s754_s0 = smov 256   ;;  %s755_s13 = smov 16  }
  0x24   :  { %37 = dma.hbm_to_vmem [thread:$0]  %s943_s1, 1024, %s32_s30, [#allocation6], %s754_s0, %s754_s0, %s755_s13  }
  0x25   :  { %742 = dma.done.wait [#allocation3], 512  }
  0x26   :  { %743 = vsyncadd [#allocation3], 4294966784 }
  0x27   :  { %744 = dma.done.wait [#allocation6], 1024  }
  0x28   :  { %745 = vsyncadd [#allocation6], 4294966272  ;;  %v48_v0 = vld [vmem:[#allocation2 + $0x10] sm:$0xff]  ;;  %vm54_vm0 = vcmask 261120   ;;  %v49_v1 = vld [vmem:[#allocation2 + $0x18] sm:$0xff]  ;;  %v756_v23 = vmov 0.0  }
  0x29   :  { %v812_v2 = vld [vmem:[#allocation2] sm:$0xff]  ;;  %v52_v3 = vmul.f32 %v48_v0, %v48_v0  ;;  %v53_v4 = vmul.f32 %v49_v1, %v49_v1  ;;  %v47_v6 = vld [vmem:[#allocation2 + $0x8] sm:$0xff]  ;;  %v177_v13 = vld [vmem:[#allocation5 + $0x18] sm:$0xff]  ;;  %264 = vmatprep.mubr.f32.mxu1 %v756_v23  ;;  %vm166_vm2 = vcmask 64512   ;;  %vm512_vm3 = vcmask 1041409   ;;  %s758_s17 = smov [#allocation8]  }
  0x2a   :  { %v50_v5 = vmul.f32 %v812_v2, %v812_v2  ;;  %v51_v7 = vmul.f32 %v47_v6, %v47_v6  ;;  %v175_v12 = vld [vmem:[#allocation5 + $0x8] sm:$0xff]  ;;  %v174_v14 = vld [vmem:[#allocation5] sm:$0xff]  ;;  %v176_v16 = vld [vmem:[#allocation5 + $0x10] sm:$0xff]  ;;  %vm515_vm4 = vcmask 1042434   ;;  %vm518_vm5 = vcmask 1043459   ;;  %s569_s18 = sshll.u32 %s758_s17, 4  ;;  %s570_s18 = int_to_ptr.vmem [resolvable:$true] %s569_s18 }
  0x2b   :  { %v61_v8 = vsel %vm54_vm0, %v52_v3, 0.0  ;;  %v64_v10 = vsel %vm54_vm0, %v53_v4, 0.0  ;;  %v608_v15 = vpack.c.bf16 %v177_v13, %v175_v12  ;;  %v179_v17 = vld [vmem:[#allocation5 + $0x28] sm:$0xff]  ;;  %v181_v18 = vld [vmem:[#allocation5 + $0x38] sm:$0xff]  ;;  %v610_v19 = vpack.c.bf16 %v176_v16, %v174_v14  ;;  %v178_v21 = vld [vmem:[#allocation5 + $0x20] sm:$0xff]  ;;  %s698_s19 = scalar_lea.vmem %s570_s18, 256  ;;  %p703_p3 = scmp.lt.s32.totalorder %s570_s18, %s570_s18 }
  0x2c   :  { %v55_v9 = vsel %vm54_vm0, %v50_v5, 0.0  ;;  %62 = vadd.xlane.f32.xlu0 %v61_v8  ;;  %v58_v11 = vsel %vm54_vm0, %v51_v7, 0.0  ;;  %v612_v20 = vpack.c.bf16 %v181_v18, %v179_v17  ;;  %v180_v22 = vld [vmem:[#allocation5 + $0x30] sm:$0xff]  ;;  %vm603_vm1 = vmpackc.low %vm54_vm0, %vm54_vm0  ;;  %v485_v16 = vlaneseq  ;;  %p699_p2 = scmp.ne.s32.totalorder %s570_s18, %s698_s19  ;;  %p704_p4 = scmp.lt.s32.totalorder %s698_s19, %s698_s19 }
  0x2d   :  { %56 = vadd.xlane.f32.xlu1 %v55_v9  ;;  %616 = vmatprep.subr.bf16.mxu1 %v608_v15  ;;  %v614_v24 = vpack.c.bf16 %v180_v22, %v178_v21 }
  0x2e   :  { %618 = vmatpush1.bf16.msra.mxu1 %v610_v19  ;;  %p705_p5 = por %p704_p4, %p703_p3 }
  0x2f   :  { %617 = vmatprep.subr.bf16.mxu1 %v612_v20 }
  0x30   :  { %65 = vadd.xlane.f32.xlu0 %v64_v10  ;;  %p706_p6 = pnand %p705_p5, %p699_p2 }
  0x31   :  { %59 = vadd.xlane.f32.xlu1 %v58_v11 }
  0x32   :  { %619 = vmatpush1.bf16.msra.mxu1 %v614_v24 }
  0x35   :  { %588 = vmatmul.mubr.msk.f32.vlgmr.msra.gmra.mrb[0].mxu1 %vm54_vm0, %v47_v6 }
  0x36   :  { %270 = vmatprep.mubr.f32.mxu1 %v756_v23 }
  0x39   :  { %589 = vmatmul.mubr.msk.f32.gmra.mrb[2].mxu1 %vm54_vm0, %v48_v0 }
  0x3a   :  { %276 = vmatprep.mubr.f32.mxu1 %v756_v23 }
  0x3d   :  { %590 = vmatmul.mubr.msk.f32.gmra.mrb[4].mxu1 %vm54_vm0, %v49_v1 }
  0xb9   :  { %v63_v25 = vpop.xlane.xlu0 %62 }
  0xba   :  { %v57_v26 = vpop.xlane.xlu1 %56  ;;  %v69_v27 = vmax.f32 %v63_v25, 1e-24 }
  0xbb   :  { %v67_v28 = vmax.f32 %v57_v26, 1e-24 }
  0xbd   :  { %v66_v29 = vpop.xlane.xlu0 %65  ;;  %630 = vrsqrt.f32 %v67_v28 }
  0xbe   :  { %632 = vrsqrt.f32 %v69_v27  ;;  %v70_v30 = vmax.f32 %v66_v29, 1e-24  ;;  %v60_v31 = vpop.xlane.xlu1 %59  ;;  %v486_v29 = vshrl.u32 %v485_v16, 7 }
  0xbf   :  { %v68_v32 = vmax.f32 %v60_v31, 1e-24 }
  0xc0   :  { %634 = vrsqrt.f32 %v70_v30 }
  0xc1   :  { %636 = vrsqrt.f32 %v68_v32 }
  0xc7   :  { %v631_v33 = vpop.eup %630 }
  0xc8   :  { %v633_v34 = vpop.eup %632  ;;  %v75_v35 = vmul.f32 %v631_v33, %v812_v2 }
  0xc9   :  { %v77_v37 = vmul.f32 %v633_v34, %v48_v0 }
  0xca   :  { %v635_v36 = vpop.eup %634  ;;  %599 = vmatprep.mubr.msk.f32.mxu0 %vm54_vm0, %v75_v35 }
  0xcb   :  { %v78_v38 = vmul.f32 %v635_v36, %v49_v1  ;;  %v637_v40 = vpop.eup %636 }
  0xcc   :  { %v76_v41 = vmul.f32 %v637_v40, %v47_v6 }
  0xcd   :  { %v602_v39 = vpack.c.bf16 %v78_v38, %v77_v37 }
  0xcf   :  { %604 = vmatprep.subr.msk.bf16.mxu0 %vm603_vm1, %v602_v39 }
  0xd0   :  { %607 = vmatpush3.bf16.xpose.msk.msra.mxu0 %vm603_vm1, %v602_v39 }
  0xd1   :  { %609 = vmatprep.subr.bf16.mxu0 %v608_v15 }
  0xd7   :  { %600 = vmatmul.mubr.msk.f32.vlgmr.msra.gmra.mrb[0].mxu0 %vm54_vm0, %v76_v41 }
  0xd8   :  { %611 = vmatpush1.bf16.msra.mxu0 %v610_v19  ;;  %258 = vmatprep.mubr.f32.mxu0 %v756_v23 }
  0xd9   :  { %613 = vmatprep.subr.bf16.mxu0 %v612_v20 }
  0xdc   :  { %615 = vmatpush1.bf16.msra.mxu0 %v614_v24 }
  0xdf   :  { %587 = vmatmul.mubr.msk.f32.vlgmr.msra.gmra.mrb[2].mxu0 %vm54_vm0, %v812_v2 }
 0x108   :  { %v266_v42 = vpop.f32.mrb[0].mxu1 }
 0x109   :  { %v268_v43 = vpop.f32.mrb[1].mxu1  ;;  %v295_v48 = vrot.slane %v266_v42, 4  ;;  %v333_v51 = vmul.f32 %v266_v42, %v266_v42 }
 0x10a   :  { %v301_v49 = vrot.slane %v268_v43, 4  ;;  %v334_v53 = vmul.f32 %v268_v43, %v268_v43 }
 0x10b   :  { %v296_v50 = vadd.f32 %v295_v48, %v266_v42  ;;  %v351_v56 = vrot.slane %v333_v51, 4  ;;  %v487_v42 = vsub.s32 0, %v486_v29 }
 0x10c   :  { %v272_v44 = vpop.f32.mrb[2].mxu1  ;;  %v302_v52 = vadd.f32 %v301_v49, %v268_v43  ;;  %v357_v60 = vrot.slane %v334_v53, 4 }
 0x10d   :  { %v274_v45 = vpop.f32.mrb[3].mxu1  ;;  %v307_v54 = vrot.slane %v272_v44, 4  ;;  %v297_v55 = vrot.slane %v296_v50, 2  ;;  %v335_v62 = vmul.f32 %v272_v44, %v272_v44  ;;  %v352_v0 = vadd.f32 %v351_v56, %v333_v51 }
 0x10e   :  { %v313_v57 = vrot.slane %v274_v45, 4  ;;  %v303_v59 = vrot.slane %v302_v52, 2  ;;  %v336_v2 = vmul.f32 %v274_v45, %v274_v45  ;;  %v358_v7 = vadd.f32 %v357_v60, %v334_v53 }
 0x10f   :  { %v308_v61 = vadd.f32 %v307_v54, %v272_v44  ;;  %v298_v63 = vadd.f32 %v297_v55, %v296_v50  ;;  %v363_v9 = vrot.slane %v335_v62, 4  ;;  %v353_v11 = vrot.slane %v352_v0, 2 }
 0x110   :  { %v278_v46 = vpop.f32.mrb[4].mxu1  ;;  %v314_v1 = vadd.f32 %v313_v57, %v274_v45  ;;  %v304_v6 = vadd.f32 %v303_v59, %v302_v52  ;;  %v369_v13 = vrot.slane %v336_v2, 4  ;;  %v359_v20 = vrot.slane %v358_v7, 2  ;;  %v483_v45 = vld [vmem:[%s944_s2] sm:$0x3]  ;;  %s757_s2 = smov 120  }
 0x111   :  { %v280_v47 = vpop.f32.mrb[5].mxu1  ;;  %v319_v58 = vrot.slane %v278_v46, 4  ;;  %v337_v5 = vmul.f32 %v278_v46, %v278_v46  ;;  %v309_v8 = vrot.slane %v308_v61, 2  ;;  %v299_v10 = vrot.slane %v298_v63, 1 }
 0x112   :  { %v325_v3 = vrot.slane %v280_v47, 4  ;;  %v315_v12 = vrot.slane %v314_v1, 2  ;;  %v338_v15 = vmul.f32 %v280_v47, %v280_v47  ;;  %v305_v19 = vrot.slane %v304_v6, 1 }
 0x113   :  { %v320_v4 = vadd.f32 %v319_v58, %v278_v46  ;;  %v375_v18 = vrot.slane %v337_v5, 4  ;;  %v310_v21 = vadd.f32 %v309_v8, %v308_v61  ;;  %v364_v22 = vadd.f32 %v363_v9, %v335_v62 }
 0x114   :  { %v326_v14 = vadd.f32 %v325_v3, %v280_v47  ;;  %v300_v23 = vadd.f32 %v299_v10, %v298_v63  ;;  %v354_v24 = vadd.f32 %v353_v11, %v352_v0  ;;  %v316_v25 = vadd.f32 %v315_v12, %v314_v1 }
 0x115   :  { %v321_v17 = vrot.slane %v320_v4, 2  ;;  %v370_v26 = vadd.f32 %v369_v13, %v336_v2  ;;  %v381_v28 = vrot.slane %v338_v15, 4  ;;  %v376_v31 = vadd.f32 %v375_v18, %v337_v5 }
 0x116   :  { %v327_v27 = vrot.slane %v326_v14, 2  ;;  %v306_v32 = vadd.f32 %v305_v19, %v304_v6  ;;  %v360_v33 = vadd.f32 %v359_v20, %v358_v7  ;;  %v311_v34 = vrot.slane %v310_v21, 1 }
 0x117   :  { %v322_v30 = vadd.f32 %v321_v17, %v320_v4  ;;  %v365_v35 = vrot.slane %v364_v22, 2  ;;  %v355_v36 = vrot.slane %v354_v24, 1  ;;  %v389_v37 = vmul.f32 0.125, %v300_v23 }
 0x118   :  { %v317_v38 = vrot.slane %v316_v25, 1  ;;  %v371_v39 = vrot.slane %v370_v26, 2  ;;  %v328_v40 = vadd.f32 %v327_v27, %v326_v14  ;;  %v382_v41 = vadd.f32 %v381_v28, %v338_v15 }
 0x119   :  { %v323_v43 = vrot.slane %v322_v30, 1  ;;  %v377_v44 = vrot.slane %v376_v31, 2  ;;  %v361_v46 = vrot.slane %v360_v33, 1  ;;  %v390_v47 = vmul.f32 0.125, %v306_v32 }
 0x11a   :  { %v312_v48 = vadd.f32 %v311_v34, %v310_v21  ;;  %v366_v49 = vadd.f32 %v365_v35, %v364_v22  ;;  %v356_v50 = vadd.f32 %v355_v36, %v354_v24  ;;  %v397_v51 = vmul.f32 %v389_v37, %v300_v23 }
 0x11b   :  { %v318_v52 = vadd.f32 %v317_v38, %v316_v25  ;;  %v372_v53 = vadd.f32 %v371_v39, %v370_v26  ;;  %v329_v54 = vrot.slane %v328_v40, 1  ;;  %v383_v55 = vrot.slane %v382_v41, 2 }
 0x11c   :  { %v833_v56 = vrot.slane %v483_v45, %v487_v42  ;;  %v491_v57 = vsub.s32 1, %v486_v29  ;;  %v324_v58 = vadd.f32 %v323_v43, %v322_v30  ;;  %v378_v59 = vadd.f32 %v377_v44, %v376_v31 }
 0x11d   :  { %v362_v61 = vadd.f32 %v361_v46, %v360_v33  ;;  %v398_v62 = vmul.f32 %v390_v47, %v306_v32  ;;  %v367_v63 = vrot.slane %v366_v49, 1  ;;  %v391_v0 = vmul.f32 0.125, %v312_v48 }
 0x11e   :  { %v405_v2 = vsub.f32 %v356_v50, %v397_v51  ;;  %v373_v3 = vrot.slane %v372_v53, 1  ;;  %v392_v4 = vmul.f32 0.125, %v318_v52  ;;  %v330_v5 = vadd.f32 %v329_v54, %v328_v40 }
 0x11f   :  { %v384_v6 = vadd.f32 %v383_v55, %v382_v41  ;;  %v836_v7 = vrot.slane %v483_v45, %v491_v57  ;;  %v379_v8 = vrot.slane %v378_v59, 1  ;;  %v393_v9 = vmul.f32 0.125, %v324_v58 }
 0x120   :  { %v839_v10 = vadd.f32 %v833_v56, %v389_v37  ;;  %v406_v11 = vsub.f32 %v362_v61, %v398_v62  ;;  %v368_v12 = vadd.f32 %v367_v63, %v366_v49  ;;  %v399_v13 = vmul.f32 %v391_v0, %v312_v48 }
 0x121   :  { %v413_v14 = vmax.f32 %v405_v2, 0.0  ;;  %v374_v15 = vadd.f32 %v373_v3, %v372_v53  ;;  %v400_v16 = vmul.f32 %v392_v4, %v318_v52  ;;  %v385_v17 = vrot.slane %v384_v6, 1 }
 0x122   :  { %v394_v18 = vmul.f32 0.125, %v330_v5  ;;  %v842_v19 = vadd.f32 %v836_v7, %v390_v47  ;;  %v380_v20 = vadd.f32 %v379_v8, %v378_v59  ;;  %v401_v21 = vmul.f32 %v393_v9, %v324_v58 }
 0x123   :  { %v511_v22 = vrot.slane %v839_v10, 7  ;;  %v414_v23 = vmax.f32 %v406_v11, 0.0  ;;  %v407_v25 = vsub.f32 %v368_v12, %v399_v13  ;;  %v845_v26 = vmul.f32 0.14285715, %v413_v14 }
 0x124   :  { %v408_v30 = vsub.f32 %v374_v15, %v400_v16  ;;  %v386_v33 = vadd.f32 %v385_v17, %v384_v6  ;;  %v402_v34 = vmul.f32 %v394_v18, %v330_v5  ;;  %v520_v35 = vrot.slane %v842_v19, 7 }
 0x125   :  { %v409_v38 = vsub.f32 %v380_v20, %v401_v21  ;;  %v848_v39 = vmul.f32 0.14285715, %v414_v23  ;;  %v415_v40 = vmax.f32 %v407_v25, 0.0  ;;  %638 = vrsqrt.f32 %v845_v26 }
 0x126   :  { %v416_v45 = vmax.f32 %v408_v30, 0.0  ;;  %v499_v46 = vadd.f32 %v833_v56, %v391_v0  ;;  %v410_v49 = vsub.f32 %v386_v33, %v402_v34  ;;  %v500_v52 = vadd.f32 %v836_v7, %v392_v4 }
 0x127   :  { %v417_v53 = vmax.f32 %v409_v38, 0.0  ;;  %640 = vrsqrt.f32 %v848_v39  ;;  %v854_v54 = vmul.f32 0.14285715, %v415_v40  ;;  %v501_v61 = vadd.f32 %v833_v56, %v393_v9 }
 0x128   :  { %v514_v62 = vrot.slane %v499_v46, 6  ;;  %v522_v4 = vrot.slane %v500_v52, 6  ;;  %v502_v11 = vadd.f32 %v836_v7, %v394_v18  ;;  %vm443_vm6 = vcmp.eq.f32.partialorder %v845_v26, inf }
 0x129   :  { %v859_v5 = vmul.f32 0.14285715, %v417_v53  ;;  %642 = vrsqrt.f32 %v854_v54  ;;  %v517_v9 = vrot.slane %v501_v61, 5  ;;  %vm450_vm7 = vcmp.eq.f32.partialorder %v848_v39, inf }
 0x12a   :  { %v446_v40 = vand.u32 2147483648, %v845_v26  ;;  %vm445_vm8 = vcmp.eq.f32.partialorder %v845_v26, 0.0  ;;  %vm452_vm9 = vcmp.eq.f32.partialorder %v848_v39, 0.0  ;;  %vm457_vm10 = vcmp.eq.f32.partialorder %v854_v54, inf }
 0x12b   :  { %vm471_vm12 = vcmp.eq.f32.partialorder %v859_v5, inf  ;;  %vm459_vm13 = vcmp.eq.f32.partialorder %v854_v54, 0.0  ;;  %vm473_vm15 = vcmp.eq.f32.partialorder %v859_v5, 0.0 }
 0x12f   :  { %v639_v17 = vpop.eup %638 }
 0x1aa   :  { %v601_v60 = vpop.f32.mrb[0].mxu0 }
 0x1ab   :  { %169 = vrot.lane.b32.xlu0 %v601_v60, %s757_s2  ;;  %v157_v1 = vpop.f32.mrb[1].mxu0  ;;  %v856_v60 = vmul.f32 0.14285715, %v416_v45 }
 0x1ac   :  { %167 = vst.msk [vmem:[#allocation7] sm:$0xff] %vm166_vm2, %v157_v1  ;;  %v418_v1 = vmax.f32 %v410_v49, 0.0 }
 0x1ad   :  { %644 = vrsqrt.f32 %v856_v60  ;;  %vm464_vm11 = vcmp.eq.f32.partialorder %v856_v60, inf  ;;  %vm466_vm14 = vcmp.eq.f32.partialorder %v856_v60, 0.0 }
 0x1ae   :  { %v864_v16 = vmul.f32 0.14285715, %v418_v1  ;;  %646 = vrsqrt.f32 %v859_v5 }
 0x1b0   :  { %648 = vrsqrt.f32 %v864_v16  ;;  %vm478_vm0 = vcmp.eq.f32.partialorder %v864_v16, inf }
 0x1b2   :  { %v260_v24 = vpop.f32.mrb[2].mxu0 }
 0x1b3   :  { %v283_v27 = vrot.slane %v260_v24, 4  ;;  %v331_v28 = vmul.f32 %v260_v24, %v260_v24  ;;  %v262_v29 = vpop.f32.mrb[3].mxu0 }
 0x1b4   :  { %v289_v31 = vrot.slane %v262_v29, 4  ;;  %v332_v32 = vmul.f32 %v262_v29, %v262_v29 }
 0x1b5   :  { %v284_v36 = vadd.f32 %v283_v27, %v260_v24  ;;  %v339_v37 = vrot.slane %v331_v28, 4  ;;  %v524_v24 = vrot.slane %v502_v11, 5 }
 0x1b6   :  { %v290_v41 = vadd.f32 %v289_v31, %v262_v29  ;;  %v345_v42 = vrot.slane %v332_v32, 4 }
 0x1b7   :  { %v285_v43 = vrot.slane %v284_v36, 2  ;;  %v340_v44 = vadd.f32 %v339_v37, %v331_v28  ;;  %v641_v28 = vpop.eup %640 }
 0x1b8   :  { %v291_v47 = vrot.slane %v290_v41, 2  ;;  %v346_v48 = vadd.f32 %v345_v42, %v332_v32  ;;  %v643_v10 = vpop.eup %642  ;;  %v449_v19 = vmul.f32 %v641_v28, %v848_v39  ;;  %v453_v42 = vand.u32 2147483648, %v848_v39 }
 0x1b9   :  { %v286_v50 = vadd.f32 %v285_v43, %v284_v36  ;;  %v341_v51 = vrot.slane %v340_v44, 2  ;;  %v645_v38 = vpop.eup %644  ;;  %v456_v43 = vmul.f32 %v643_v10, %v854_v54 }
 0x1ba   :  { %v292_v55 = vadd.f32 %v291_v47, %v290_v41  ;;  %v347_v57 = vrot.slane %v346_v48, 2  ;;  %v463_v45 = vmul.f32 %v645_v38, %v856_v60 }
 0x1bb   :  { %v287_v58 = vrot.slane %v286_v50, 1  ;;  %v342_v59 = vadd.f32 %v341_v51, %v340_v44  ;;  %v451_v44 = vsel %vm450_vm7, %v848_v39, %v449_v19  ;;  %v458_v49 = vsel %vm457_vm10, %v854_v54, %v456_v43 }
 0x1bc   :  { %v293_v63 = vrot.slane %v292_v55, 1  ;;  %v348_v0 = vadd.f32 %v347_v57, %v346_v48  ;;  %v465_v39 = vsel %vm464_vm11, %v856_v60, %v463_v45  ;;  %v467_v51 = vand.u32 2147483648, %v856_v60 }
 0x1bd   :  { %v288_v2 = vadd.f32 %v287_v58, %v286_v50  ;;  %v343_v3 = vrot.slane %v342_v59, 1  ;;  %v460_v50 = vand.u32 2147483648, %v854_v54  ;;  %vm538_vm7 = vcmask 1045509  }
 0x1be   :  { %v294_v6 = vadd.f32 %v293_v63, %v292_v55  ;;  %v349_v8 = vrot.slane %v348_v0, 1  ;;  %v474_v55 = vand.u32 2147483648, %v859_v5 }
 0x1bf   :  { %v344_v12 = vadd.f32 %v343_v3, %v342_v59  ;;  %v387_v13 = vmul.f32 0.125, %v288_v2  ;;  %v481_v59 = vand.u32 2147483648, %v864_v16  ;;  %v461_v3 = vsel %vm459_vm13, %v460_v50, %v458_v49 }
 0x1c0   :  { %v350_v14 = vadd.f32 %v349_v8, %v348_v0  ;;  %v388_v15 = vmul.f32 0.125, %v294_v6 }
 0x1c1   :  { %v395_v20 = vmul.f32 %v387_v13, %v288_v2  ;;  %v495_v21 = vadd.f32 %v833_v56, %v387_v13 }
 0x1c2   :  { %v396_v23 = vmul.f32 %v388_v15, %v294_v6  ;;  %v496_v18 = vadd.f32 %v836_v7, %v388_v15 }
 0x1c3   :  { %v403_v25 = vsub.f32 %v344_v12, %v395_v20  ;;  %v513_v27 = vsel %vm512_vm3, %v511_v22, %v495_v21  ;;  %v442_v22 = vmul.f32 %v639_v17, %v845_v26 }
 0x1c4   :  { %v404_v29 = vsub.f32 %v350_v14, %v396_v23  ;;  %v516_v30 = vsel %vm515_vm4, %v514_v62, %v513_v27  ;;  %v521_v56 = vsel %vm512_vm3, %v520_v35, %v496_v18  ;;  %v647_v35 = vpop.eup %646  ;;  %vm480_vm3 = vcmp.eq.f32.partialorder %v864_v16, 0.0 }
 0x1c5   :  { %v411_v31 = vmax.f32 %v403_v25, 0.0  ;;  %v519_v32 = vsel %vm518_vm5, %v517_v9, %v516_v30  ;;  %v523_v33 = vsel %vm515_vm4, %v522_v4, %v521_v56  ;;  %v444_v41 = vsel %vm443_vm6, %v845_v26, %v442_v22  ;;  %v649_v46 = vpop.eup %648 }
 0x1c6   :  { %v412_v7 = vmax.f32 %v404_v29, 0.0  ;;  %v525_v34 = vsel %vm518_vm5, %v524_v24, %v523_v33  ;;  %528 = vst [vmem:[#allocation8] sm:$0xf] %v519_v32  ;;  %v470_v47 = vmul.f32 %v647_v35, %v859_v5  ;;  %v447_v48 = vsel %vm445_vm8, %v446_v40, %v444_v41 }
 0x1c7   :  { %v419_v36 = vmul.f32 0.14285715, %v411_v31  ;;  %529 = vst [vmem:[#allocation8 + $0x8] sm:$0xf] %v525_v34  ;;  %v454_v26 = vsel %vm452_vm9, %v453_v42, %v451_v44  ;;  %v477_v52 = vmul.f32 %v649_v46, %v864_v16  ;;  %v468_v4 = vsel %vm466_vm14, %v467_v51, %v465_v39 }
 0x1c8   :  { %v420_v37 = vmul.f32 0.14285715, %v412_v7  ;;  %v472_v53 = vsel %vm471_vm12, %v859_v5, %v470_v47  ;;  %vm540_vm8 = vcmask 1046534   ;;  %vm542_vm9 = vcmask 1047559  }
 0x1c9   :  { %650 = vrsqrt.f32 %v419_v36  ;;  %vm429_vm1 = vcmp.eq.f32.partialorder %v419_v36, inf  ;;  %v432_v58 = vand.u32 2147483648, %v419_v36  ;;  %vm431_vm4 = vcmp.eq.f32.partialorder %v419_v36, 0.0 }
 0x1ca   :  { %652 = vrsqrt.f32 %v420_v37  ;;  %vm436_vm5 = vcmp.eq.f32.partialorder %v420_v37, inf  ;;  %v439_v63 = vand.u32 2147483648, %v420_v37  ;;  %vm438_vm6 = vcmp.eq.f32.partialorder %v420_v37, 0.0 }
 0x1cb   :  { %v479_v1 = vsel %vm478_vm0, %v864_v16, %v477_v52  ;;  %v475_v11 = vsel %vm473_vm15, %v474_v55, %v472_v53 }
 0x1cc   :  { %v482_v13 = vsel %vm480_vm3, %v481_v59, %v479_v1 }
 0x1d3   :  { %v651_v57 = vpop.eup %650 }
 0x1d4   :  { %v653_v61 = vpop.eup %652  ;;  %v428_v62 = vmul.f32 %v651_v57, %v419_v36 }
 0x1d5   :  { %v435_v0 = vmul.f32 %v653_v61, %v420_v37 }
 0x1d6   :  { %v430_v2 = vsel %vm429_vm1, %v419_v36, %v428_v62 }
 0x1d7   :  { %v433_v6 = vsel %vm431_vm4, %v432_v58, %v430_v2  ;;  %v437_v8 = vsel %vm436_vm5, %v420_v37, %v435_v0 }
 0x1d8   :  { %v440_v12 = vsel %vm438_vm6, %v439_v63, %v437_v8  ;;  %v539_v9 = vsel %vm538_vm7, %v447_v48, %v433_v6 }
 0x1d9   :  { %v541_v14 = vsel %vm540_vm8, %v461_v3, %v539_v9  ;;  %v544_v54 = vsel %vm538_vm7, %v454_v26, %v440_v12 }
 0x1da   :  { %v543_v15 = vsel %vm542_vm9, %v475_v11, %v541_v14  ;;  %v545_v17 = vsel %vm540_vm8, %v468_v4, %v544_v54 }
 0x1db   :  { %v546_v60 = vsel %vm542_vm9, %v482_v13, %v545_v17  ;;  %549 = vst [vmem:[#allocation8] sm:$0xf0] %v543_v15 }
 0x1dc   :  { %550 = vst [vmem:[#allocation8 + $0x8] sm:$0xf0] %v546_v60 }
 0x1dd   :  { %709 = shalt.err (!%p706_p6)
}
 0x1de   :  { %s710_s22 = scalar_lea.hbm %s946_s4, 256 }
 0x1df   :  { %p711_p7 = scmp.ne.s32.totalorder %s946_s4, %s710_s22  ;;  %p714_p8 = scmp.lt.u32.totalorder %s710_s22, %s946_s4 }
 0x1e1   :  { %p716_p9 = pnand %p714_p8, %p711_p7 }
 0x1e3   :  { %719 = shalt.err (!%p716_p9)
}
 0x1e4   :  { %572 = dma.vmem_to_hbm [thread:$0]  %s570_s18, 256, %s946_s4, [#allocation9]  }
 0x1e5   :  { %s759_s5 = smov [#allocation7]  }
 0x1e6   :  { %s556_s6 = sshll.u32 %s759_s5, 4  ;;  %s557_s6 = int_to_ptr.vmem [resolvable:$true] %s556_s6 }
 0x1e7   :  { %s720_s7 = scalar_lea.vmem %s557_s6, 256  ;;  %p725_p11 = scmp.lt.s32.totalorder %s557_s6, %s557_s6 }
 0x1e8   :  { %p721_p10 = scmp.ne.s32.totalorder %s557_s6, %s720_s7  ;;  %p726_p12 = scmp.lt.s32.totalorder %s720_s7, %s720_s7 }
 0x1ea   :  { %p727_p13 = por %p726_p12, %p725_p11 }
 0x1ec   :  { %p728_p0 = pnand %p727_p13, %p721_p10 }
 0x21d   :  { %v170_v5 = vpop.permute.xlu0 %169 }
 0x21e   :  { %173 = vst.msk [vmem:[#allocation7 + $0x8] sm:$0xff] %vm166_vm2, %v170_v5 }
 0x21f   :  { %731 = shalt.err (!%p728_p0)
}
 0x220   :  { %s732_s10 = scalar_lea.hbm %s945_s3, 256 }
 0x221   :  { %p733_p1 = scmp.ne.s32.totalorder %s945_s3, %s732_s10  ;;  %p736_p2 = scmp.lt.u32.totalorder %s732_s10, %s945_s3 }
 0x223   :  { %p738_p3 = pnand %p736_p2, %p733_p1 }
 0x225   :  { %741 = shalt.err (!%p738_p3)
}
 0x226   :  { %562 = dma.vmem_to_hbm [thread:$0]  %s557_s6, 256, %s945_s3, [#allocation4], %s751_s25, %s751_s25, %s752_s26  }
 0x227   :  { %746 = dma.done.wait [#allocation4], 256  }
 0x228   :  { %747 = vsyncadd [#allocation4], 4294967040 }
 0x229   :  { %748 = dma.done.wait [#allocation9], 256  }
 0x22a   :  { %749 = vsyncadd [#allocation9], 4294967040 }
 0x22b   :  { %579 = vsyncpa [#allocation3], 1 }
 0x22c   :  { %580 = vsyncpa [#allocation6], 1 }
 0x22d   :  { %581 = vsyncpa [#allocation4], 1 }
 0x22e   :  { %582 = vsyncpa [#allocation9], 1 }

</bundles_post_ra>
